<compile_context>
chip_gen: v7x
topology: tpu7x:2x2x1
jax: 0.10.0
libtpu: 0.0.40
codegen_flags: <defaults>
</compile_context>

<pallas_src>
import functools

import jax
import jax.numpy as jnp
from jax.experimental import pallas as pl
from jax.experimental.pallas import tpu as pltpu


def _og_dice_kernel(x_ref, lab_ref, out_ref, acc_i_ref, acc_z_ref, acc_y_ref,
                    *, hw, need_mask):
    """One (pixel-split, batch element, pixel tile) grid step.

    x_ref:   (C, T) logits for this batch element / pixel tile
    lab_ref: (1, T) integer labels
    out_ref: (C, 3) [intersect, z_sum, y_sum] for this (split, batch) slot
    acc_*:   (C, 128) lane-shaped running partial sums (VMEM scratch)
    """
    t = pl.program_id(2)
    last_t = pl.num_programs(2) - 1

    @pl.when(t == 0)
    def _init():
        acc_i_ref[...] = jnp.zeros_like(acc_i_ref)
        acc_z_ref[...] = jnp.zeros_like(acc_z_ref)
        acc_y_ref[...] = jnp.zeros_like(acc_y_ref)

    x = x_ref[...].astype(jnp.float32)                      # (C, T)
    lab = lab_ref[...].astype(jnp.int32)                    # (1, T)
    C, T = x.shape

    if need_mask:
        # Global tile index; fabricated tiles of the second split and the
        # padded tail of the last real tile are fully masked here.
        tg = pl.program_id(0) * pl.num_programs(2) + t
        lane = jax.lax.broadcasted_iota(jnp.int32, (1, T), 1)
        valid = (tg * T + lane) < hw                        # (1, T)
        lab = jnp.where(valid, lab, -1)                     # masks the one-hot

    # ---- softmax over the channel (sublane) axis, per pixel ----
    # exp(x - max) <= 1 keeps garbage/OOB lanes finite; no mask needed on x.
    m = jnp.max(x, axis=0, keepdims=True)                   # (1, T)
    e = jnp.exp(x - m)                                      # (C, T)
    inv = pl.reciprocal(jnp.sum(e, axis=0, keepdims=True))  # (1, T)
    score = e * inv                                         # (C, T)
    if need_mask:
        score = jnp.where(valid, score, 0.0)

    # ---- one-hot target via (C, 1) class-id compare (broadcast in-op) ----
    cls = jax.lax.broadcasted_iota(jnp.int32, (C, 1), 0)    # (C, 1)
    tgt = (lab == cls).astype(jnp.float32)                  # (C, T)

    # ---- lane-shaped partial sums: (C, T) -> (C, T//128, 128), reduce the
    # middle axis with lane-aligned adds, accumulate into VMEM scratch ----
    g = T // 128
    acc_i_ref[...] += (score * tgt).reshape(C, g, 128).sum(axis=1)
    acc_z_ref[...] += (score * score).reshape(C, g, 128).sum(axis=1)
    acc_y_ref[...] += tgt.reshape(C, g, 128).sum(axis=1)

    @pl.when(t == last_t)
    def _finalize():
        # Cross-lane reduce + narrow store only once per (split, batch).
        out_ref[:, 0:1] = jnp.sum(acc_i_ref[...], axis=1, keepdims=True)
        out_ref[:, 1:2] = jnp.sum(acc_z_ref[...], axis=1, keepdims=True)
        out_ref[:, 2:3] = jnp.sum(acc_y_ref[...], axis=1, keepdims=True)


def _sublane_multiple(itemsize):
    return {4: 8, 2: 16, 1: 32}.get(int(itemsize), 8)


def _vmem_plan():
    """(in-kernel footprint budget, scoped vmem limit) per chip generation."""
    kind = ""
    try:
        kind = jax.devices()[0].device_kind.lower()
    except Exception:
        pass
    if any(v in kind for v in ("v4", "v5", "v6")):
        return 48 << 20, 96 << 20        # 128 MiB physical VMEM (v4/v5e/v6e)
    return 24 << 20, 48 << 20            # v7x (64 MiB physical) / unknown


def _pick_tile_p(C, HW, logit_itemsize, label_itemsize, budget_bytes):
    """Pixel-tile width: multiple of 128, sized against the *actual* VMEM
    footprint: sublane-padded C, ~6 live (C_pad, T) f32 temporaries, and
    double-buffered logit + label input blocks."""
    hw_pad = pl.cdiv(HW, 128) * 128
    c_pad_f32 = pl.cdiv(C, 8) * 8
    in_mult = _sublane_multiple(logit_itemsize)
    c_pad_in = pl.cdiv(C, in_mult) * in_mult
    lab_pad = _sublane_multiple(label_itemsize)
    n_interm = 6     # x, e, score, tgt, score*tgt, score*score (f32)
    n_buf = 2        # BlockSpec double-buffering
    per_lane_bytes = (n_interm * c_pad_f32 * 4
                      + n_buf * c_pad_in * logit_itemsize
                      + n_buf * lab_pad * label_itemsize)
    tile = budget_bytes // per_lane_bytes
    tile = max(128, (tile // 128) * 128)
    tile = min(tile, 64 * 1024, hw_pad)
    return int(tile)


def og_dice_loss(inputs, target, weight=None, softmax=True, tile_p=None):
    """inputs: (N, C, H, W) logits (any float dtype; bf16 recommended when the
    producer already has it); target: (N, H, W) integer labels."""
    assert softmax, "only the softmax=True path is implemented"
    N, C, H, W = inputs.shape
    HW = H * W

    # Copy-free views of the contiguous NCHW / NHW tensors — no transpose and
    # no dtype widening of the dominant logits stream.
    x3 = inputs.reshape(N, C, HW)
    if jnp.issubdtype(target.dtype, jnp.integer) and target.dtype.itemsize <= 4:
        lab3 = target.reshape(N, 1, HW)      # pass narrow int dtypes through
    else:
        lab3 = target.reshape(N, 1, HW).astype(jnp.int32)

    budget_bytes, vmem_limit = _vmem_plan()
    if tile_p is None:
        tile_p = _pick_tile_p(C, HW, x3.dtype.itemsize, lab3.dtype.itemsize,
                              budget_bytes)
    assert tile_p > 0 and tile_p % 128 == 0
    num_t = pl.cdiv(HW, tile_p)

    # Split the pixel-tile range across a leading "parallel" axis so both
    # TensorCores on a megacore chip (v7x) get work even when N == 1.
    splits = 2 if num_t >= 2 else 1
    ntps = pl.cdiv(num_t, splits)            # tiles per split
    need_mask = (splits * ntps * tile_p) != HW

    kernel = functools.partial(_og_dice_kernel, hw=HW, need_mask=need_mask)

    def in_map(s, n, t):
        # Clamp fabricated trailing tiles of the second split onto the last
        # real tile; their contribution is fully masked in-kernel.
        return (n, 0, jnp.minimum(s * ntps + t, num_t - 1))

    partials = pl.pallas_call(
        kernel,
        out_shape=jax.ShapeDtypeStruct((splits, N, C, 3), jnp.float32),
        grid=(splits, N, ntps),
        in_specs=[
            pl.BlockSpec((None, C, tile_p), in_map),
            pl.BlockSpec((None, 1, tile_p), in_map),
        ],
        out_specs=pl.BlockSpec((None, None, C, 3), lambda s, n, t: (s, n, 0, 0)),
        scratch_shapes=[
            pltpu.VMEM((C, 128), jnp.float32),   # intersect partials
            pltpu.VMEM((C, 128), jnp.float32),   # sum(score^2) partials
            pltpu.VMEM((C, 128), jnp.float32),   # sum(target) partials
        ],
        compiler_params=pltpu.CompilerParams(
            dimension_semantics=("parallel", "parallel", "arbitrary"),
            vmem_limit_bytes=vmem_limit,
        ),
    )(x3, lab3)

    # Tiny O(splits*N*C) epilogue in plain JAX: reduce partials, dice, weights.
    sums = jnp.sum(partials, axis=(0, 1))                  # (C, 3)
    intersect, z_sum, y_sum = sums[:, 0], sums[:, 1], sums[:, 2]
    smooth = jnp.float32(1e-05)
    dice = 1.0 - (2.0 * intersect + smooth) / (z_sum + y_sum + smooth)
    if weight is None:
        weight = jnp.ones((C,), dtype=jnp.float32)
    w = jnp.asarray(weight, dtype=jnp.float32).reshape(C)
    return jnp.sum(dice * w) / jnp.float32(C)


def _reference(inputs, target, weight=None):
    # Pure-JAX reference mirroring the PyTorch module.
    N, C, H, W = inputs.shape
    s = jax.nn.softmax(inputs.astype(jnp.float32), axis=1)
    t = jax.nn.one_hot(target, C, axis=1, dtype=jnp.float32)
    if weight is None:
        weight = jnp.ones((C,), dtype=jnp.float32)
    smooth = 1e-05
    loss = 0.0
    for i in range(C):
        inter = jnp.sum(s[:, i] * t[:, i])
        y = jnp.sum(t[:, i] * t[:, i])
        z = jnp.sum(s[:, i] * s[:, i])
        dice = 1.0 - (2.0 * inter + smooth) / (z + y + smooth)
        loss = loss + dice * weight[i]
    return loss / C


if __name__ == "__main__":
    key = jax.random.PRNGKey(0)
    k1, k2, k3, k4, k5, k6 = jax.random.split(key, 6)

    # Case 1: baseline small shape, single pixel tile (no split, no mask).
    N, C, H, W = 2, 4, 16, 16
    inputs = jax.random.normal(k1, (N, C, H, W), dtype=jnp.float32)
    target = jax.random.randint(k2, (N, H, W), 0, C, dtype=jnp.int32)
    ref = jax.block_until_ready(_reference(inputs, target))
    loss = jax.block_until_ready(og_dice_loss(inputs, target))
    assert jnp.allclose(loss, ref, rtol=1e-5, atol=1e-6), (loss, ref)

    # Case 2: forced 128-pixel tiles -> pixel range split across the leading
    # "parallel" (core) axis with exact coverage (no masking).
    loss2 = jax.block_until_ready(og_dice_loss(inputs, target, tile_p=128))
    assert jnp.allclose(loss2, ref, rtol=1e-5, atol=1e-6), (loss2, ref)

    # Case 3: bf16 logits pass straight through (halved HBM traffic; kernel
    # upcasts to f32 in VMEM).
    loss3 = jax.block_until_ready(og_dice_loss(inputs.astype(jnp.bfloat16), target))
    ref3 = jax.block_until_ready(_reference(inputs.astype(jnp.bfloat16), target))
    assert jnp.allclose(loss3, ref3, rtol=1e-5, atol=1e-6), (loss3, ref3)

    # Case 4: ragged spatial size (H*W not a multiple of 128) -> in-kernel
    # lane mask on the padded tail.
    N4, C4, H4, W4 = 2, 3, 7, 9
    inputs4 = jax.random.normal(k3, (N4, C4, H4, W4), dtype=jnp.float32)
    target4 = jax.random.randint(k4, (N4, H4, W4), 0, C4, dtype=jnp.int32)
    loss4 = jax.block_until_ready(og_dice_loss(inputs4, target4))
    ref4 = jax.block_until_ready(_reference(inputs4, target4))
    assert jnp.allclose(loss4, ref4, rtol=1e-5, atol=1e-6), (loss4, ref4)

    # Case 5: batch of 1 with an odd tile count (HW=576, tile=128 -> 5 tiles,
    # 2 splits x 3 tiles) -> exercises the clamped, fully-masked fabricated
    # trailing tile of the second split plus the partial last real tile.
    N5, C5, H5, W5 = 1, 4, 24, 24
    inputs5 = jax.random.normal(k5, (N5, C5, H5, W5), dtype=jnp.float32)
    target5 = jax.random.randint(k6, (N5, H5, W5), 0, C5, dtype=jnp.int32)
    loss5 = jax.block_until_ready(og_dice_loss(inputs5, target5, tile_p=128))
    ref5 = jax.block_until_ready(_reference(inputs5, target5))
    assert jnp.allclose(loss5, ref5, rtol=1e-5, atol=1e-6), (loss5, ref5)

    print("KERNEL_OK")
</pallas_src>

<mosaic_0001>
module attributes {stable_mosaic.version = 11 : i64} {
  func.func @_og_dice_kernel(%arg0: i32, %arg1: i32, %arg2: i32, %arg3: memref<1x4x256xf32, #tpu.memory_space<vmem>>, %arg4: memref<1x1x256xi32, #tpu.memory_space<vmem>>, %arg5: memref<1x1x4x3xf32, #tpu.memory_space<vmem>>, %arg6: memref<4x128xf32, #tpu.memory_space<vmem>>, %arg7: memref<4x128xf32, #tpu.memory_space<vmem>>, %arg8: memref<4x128xf32, #tpu.memory_space<vmem>>) attributes {dimension_semantics = [#tpu.dimension_semantics<parallel>, #tpu.dimension_semantics<parallel>, #tpu.dimension_semantics<arbitrary>], iteration_bounds = array<i64: 1, 2, 1>, scalar_prefetch = 0 : i64, scratch_operands = 3 : i64, tpu.core_type = #tpu.core_type<tc>, window_params = [{transform_indices = @transform_0, window_bounds = array<i64: 1, 4, 256>}, {transform_indices = @transform_1, window_bounds = array<i64: 1, 1, 256>}, {transform_indices = @transform_2, window_bounds = array<i64: 1, 1, 4, 3>}]} {
    %c0_i32 = arith.constant 0 : i32
    %0 = arith.cmpi eq, %arg2, %c0_i32 : i32
    %1 = arith.extui %0 : i1 to i32
    %c0_i32_0 = arith.constant 0 : i32
    %2 = arith.cmpi ne, %1, %c0_i32_0 : i32
    scf.if %2 {
      %cst_24 = arith.constant 0.000000e+00 : f32
      %43 = vector.broadcast %cst_24 : f32 to vector<4x128xf32>
      %c0_25 = arith.constant 0 : index
      %c0_26 = arith.constant 0 : index
      %44 = vector.load %arg6[%c0_25, %c0_26] : memref<4x128xf32, #tpu.memory_space<vmem>>, vector<4x128xf32>
      tpu.vector_store %arg6[%c0_25, %c0_26], %43 {strides = array<i32>} : memref<4x128xf32, #tpu.memory_space<vmem>>, vector<4x128xf32>,
      %cst_27 = arith.constant 0.000000e+00 : f32
      %45 = vector.broadcast %cst_27 : f32 to vector<4x128xf32>
      %c0_28 = arith.constant 0 : index
      %c0_29 = arith.constant 0 : index
      %46 = vector.load %arg7[%c0_28, %c0_29] : memref<4x128xf32, #tpu.memory_space<vmem>>, vector<4x128xf32>
      tpu.vector_store %arg7[%c0_28, %c0_29], %45 {strides = array<i32>} : memref<4x128xf32, #tpu.memory_space<vmem>>, vector<4x128xf32>,
      %cst_30 = arith.constant 0.000000e+00 : f32
      %47 = vector.broadcast %cst_30 : f32 to vector<4x128xf32>
      %c0_31 = arith.constant 0 : index
      %c0_32 = arith.constant 0 : index
      %48 = vector.load %arg8[%c0_31, %c0_32] : memref<4x128xf32, #tpu.memory_space<vmem>>, vector<4x128xf32>
      tpu.vector_store %arg8[%c0_31, %c0_32], %47 {strides = array<i32>} : memref<4x128xf32, #tpu.memory_space<vmem>>, vector<4x128xf32>,
    } else {
    }
    %c0 = arith.constant 0 : index
    %c0_1 = arith.constant 0 : index
    %c0_2 = arith.constant 0 : index
    %3 = vector.load %arg3[%c0, %c0_1, %c0_2] : memref<1x4x256xf32, #tpu.memory_space<vmem>>, vector<1x4x256xf32>
    %4 = vector.shape_cast %3 : vector<1x4x256xf32> to vector<4x256xf32>
    %c0_3 = arith.constant 0 : index
    %c0_4 = arith.constant 0 : index
    %c0_5 = arith.constant 0 : index
    %5 = vector.load %arg4[%c0_3, %c0_4, %c0_5] : memref<1x1x256xi32, #tpu.memory_space<vmem>>, vector<1x1x256xi32>
    %6 = vector.shape_cast %5 : vector<1x1x256xi32> to vector<1x256xi32>
    %cst = arith.constant dense<0xFF800000> : vector<256xf32>
    %7 = vector.multi_reduction <maximumf>, %4, %cst [0] : vector<4x256xf32> to vector<256xf32>
    %8 = vector.shape_cast %7 : vector<256xf32> to vector<1x256xf32>
    %9 = vector.broadcast %8 : vector<1x256xf32> to vector<4x256xf32>
    %10 = arith.subf %4, %9 : vector<4x256xf32>
    %11 = math.exp %10 : vector<4x256xf32>
    %cst_6 = arith.constant dense<0.000000e+00> : vector<256xf32>
    %12 = vector.multi_reduction <add>, %11, %cst_6 [0] : vector<4x256xf32> to vector<256xf32>
    %13 = vector.shape_cast %12 : vector<256xf32> to vector<1x256xf32>
    %14 = tpu.reciprocal %13 : vector<1x256xf32> -> vector<1x256xf32>
    %15 = vector.broadcast %14 : vector<1x256xf32> to vector<4x256xf32>
    %16 = arith.mulf %11, %15 : vector<4x256xf32>
    %17 = tpu.iota {dimensions = array<i32: 0>} : vector<4x1xi32>
    %18 = vector.broadcast %6 : vector<1x256xi32> to vector<4x256xi32>
    %19 = vector.broadcast %17 : vector<4x1xi32> to vector<4x256xi32>
    %20 = arith.cmpi eq, %18, %19 : vector<4x256xi32>
    %21 = arith.extui %20 : vector<4x256xi1> to vector<4x256xi32>
    %22 = arith.sitofp %21 : vector<4x256xi32> to vector<4x256xf32>
    %c0_7 = arith.constant 0 : index
    %c0_8 = arith.constant 0 : index
    %23 = vector.load %arg6[%c0_7, %c0_8] : memref<4x128xf32, #tpu.memory_space<vmem>>, vector<4x128xf32>
    %24 = arith.mulf %16, %22 : vector<4x256xf32>
    %25 = vector.shape_cast %24 : vector<4x256xf32> to vector<4x2x128xf32>
    %cst_9 = arith.constant dense<0.000000e+00> : vector<4x128xf32>
    %26 = vector.multi_reduction <add>, %25, %cst_9 [1] : vector<4x2x128xf32> to vector<4x128xf32>
    %27 = arith.addf %23, %26 : vector<4x128xf32>
    %c0_10 = arith.constant 0 : index
    %c0_11 = arith.constant 0 : index
    %28 = vector.load %arg6[%c0_10, %c0_11] : memref<4x128xf32, #tpu.memory_space<vmem>>, vector<4x128xf32>
    tpu.vector_store %arg6[%c0_10, %c0_11], %27 {strides = array<i32>} : memref<4x128xf32, #tpu.memory_space<vmem>>, vector<4x128xf32>,
    %c0_12 = arith.constant 0 : index
    %c0_13 = arith.constant 0 : index
    %29 = vector.load %arg7[%c0_12, %c0_13] : memref<4x128xf32, #tpu.memory_space<vmem>>, vector<4x128xf32>
    %30 = arith.mulf %16, %16 : vector<4x256xf32>
    %31 = vector.shape_cast %30 : vector<4x256xf32> to vector<4x2x128xf32>
    %cst_14 = arith.constant dense<0.000000e+00> : vector<4x128xf32>
    %32 = vector.multi_reduction <add>, %31, %cst_14 [1] : vector<4x2x128xf32> to vector<4x128xf32>
    %33 = arith.addf %29, %32 : vector<4x128xf32>
    %c0_15 = arith.constant 0 : index
    %c0_16 = arith.constant 0 : index
    %34 = vector.load %arg7[%c0_15, %c0_16] : memref<4x128xf32, #tpu.memory_space<vmem>>, vector<4x128xf32>
    tpu.vector_store %arg7[%c0_15, %c0_16], %33 {strides = array<i32>} : memref<4x128xf32, #tpu.memory_space<vmem>>, vector<4x128xf32>,
    %c0_17 = arith.constant 0 : index
    %c0_18 = arith.constant 0 : index
    %35 = vector.load %arg8[%c0_17, %c0_18] : memref<4x128xf32, #tpu.memory_space<vmem>>, vector<4x128xf32>
    %36 = vector.shape_cast %22 : vector<4x256xf32> to vector<4x2x128xf32>
    %cst_19 = arith.constant dense<0.000000e+00> : vector<4x128xf32>
    %37 = vector.multi_reduction <add>, %36, %cst_19 [1] : vector<4x2x128xf32> to vector<4x128xf32>
    %38 = arith.addf %35, %37 : vector<4x128xf32>
    %c0_20 = arith.constant 0 : index
    %c0_21 = arith.constant 0 : index
    %39 = vector.load %arg8[%c0_20, %c0_21] : memref<4x128xf32, #tpu.memory_space<vmem>>, vector<4x128xf32>
    tpu.vector_store %arg8[%c0_20, %c0_21], %38 {strides = array<i32>} : memref<4x128xf32, #tpu.memory_space<vmem>>, vector<4x128xf32>,
    %c0_i32_22 = arith.constant 0 : i32
    %40 = arith.cmpi eq, %arg2, %c0_i32_22 : i32
    %41 = arith.extui %40 : i1 to i32
    %c0_i32_23 = arith.constant 0 : i32
    %42 = arith.cmpi ne, %41, %c0_i32_23 : i32
    scf.if %42 {
      %c0_24 = arith.constant 0 : index
      %c0_25 = arith.constant 0 : index
      %43 = vector.load %arg6[%c0_24, %c0_25] : memref<4x128xf32, #tpu.memory_space<vmem>>, vector<4x128xf32>
      %cst_26 = arith.constant dense<0.000000e+00> : vector<4xf32>
      %44 = vector.multi_reduction <add>, %43, %cst_26 [1] : vector<4x128xf32> to vector<4xf32>
      %45 = vector.shape_cast %44 : vector<4xf32> to vector<4x1xf32>
      %c0_27 = arith.constant 0 : index
      %c0_28 = arith.constant 0 : index
      %c0_29 = arith.constant 0 : index
      %c0_30 = arith.constant 0 : index
      %46 = vector.load %arg5[%c0_27, %c0_28, %c0_29, %c0_30] : memref<1x1x4x3xf32, #tpu.memory_space<vmem>>, vector<1x1x4x1xf32>
      %47 = vector.shape_cast %46 : vector<1x1x4x1xf32> to vector<4x1xf32>
      %48 = vector.shape_cast %45 : vector<4x1xf32> to vector<1x1x4x1xf32>
      tpu.vector_store %arg5[%c0_27, %c0_28, %c0_29, %c0_30], %48 {strides = array<i32>} : memref<1x1x4x3xf32, #tpu.memory_space<vmem>>, vector<1x1x4x1xf32>,
      %c0_31 = arith.constant 0 : index
      %c0_32 = arith.constant 0 : index
      %49 = vector.load %arg7[%c0_31, %c0_32] : memref<4x128xf32, #tpu.memory_space<vmem>>, vector<4x128xf32>
      %cst_33 = arith.constant dense<0.000000e+00> : vector<4xf32>
      %50 = vector.multi_reduction <add>, %49, %cst_33 [1] : vector<4x128xf32> to vector<4xf32>
      %51 = vector.shape_cast %50 : vector<4xf32> to vector<4x1xf32>
      %c0_34 = arith.constant 0 : index
      %c0_35 = arith.constant 0 : index
      %c0_36 = arith.constant 0 : index
      %c1 = arith.constant 1 : index
      %52 = vector.load %arg5[%c0_34, %c0_35, %c0_36, %c1] : memref<1x1x4x3xf32, #tpu.memory_space<vmem>>, vector<1x1x4x1xf32>
      %53 = vector.shape_cast %52 : vector<1x1x4x1xf32> to vector<4x1xf32>
      %54 = vector.shape_cast %51 : vector<4x1xf32> to vector<1x1x4x1xf32>
      tpu.vector_store %arg5[%c0_34, %c0_35, %c0_36, %c1], %54 {strides = array<i32>} : memref<1x1x4x3xf32, #tpu.memory_space<vmem>>, vector<1x1x4x1xf32>,
      %c0_37 = arith.constant 0 : index
      %c0_38 = arith.constant 0 : index
      %55 = vector.load %arg8[%c0_37, %c0_38] : memref<4x128xf32, #tpu.memory_space<vmem>>, vector<4x128xf32>
      %cst_39 = arith.constant dense<0.000000e+00> : vector<4xf32>
      %56 = vector.multi_reduction <add>, %55, %cst_39 [1] : vector<4x128xf32> to vector<4xf32>
      %57 = vector.shape_cast %56 : vector<4xf32> to vector<4x1xf32>
      %c0_40 = arith.constant 0 : index
      %c0_41 = arith.constant 0 : index
      %c0_42 = arith.constant 0 : index
      %c2 = arith.constant 2 : index
      %58 = vector.load %arg5[%c0_40, %c0_41, %c0_42, %c2] : memref<1x1x4x3xf32, #tpu.memory_space<vmem>>, vector<1x1x4x1xf32>
      %59 = vector.shape_cast %58 : vector<1x1x4x1xf32> to vector<4x1xf32>
      %60 = vector.shape_cast %57 : vector<4x1xf32> to vector<1x1x4x1xf32>
      tpu.vector_store %arg5[%c0_40, %c0_41, %c0_42, %c2], %60 {strides = array<i32>} : memref<1x1x4x3xf32, #tpu.memory_space<vmem>>, vector<1x1x4x1xf32>,
    } else {
    }
    return
  }
  func.func @transform_0(%arg0: i32, %arg1: i32, %arg2: i32) -> (i32, i32, i32) {
    %c1_i32 = arith.constant 1 : i32
    %0 = arith.muli %arg0, %c1_i32 : i32
    %1 = arith.addi %0, %arg2 : i32
    %c0_i32 = arith.constant 0 : i32
    %2 = arith.minsi %1, %c0_i32 : i32
    %c0_i32_0 = arith.constant 0 : i32
    %c0_i32_1 = arith.constant 0 : i32
    return %arg1, %c0_i32_0, %2 : i32, i32, i32
  }
  func.func @transform_1(%arg0: i32, %arg1: i32, %arg2: i32) -> (i32, i32, i32) {
    %c1_i32 = arith.constant 1 : i32
    %0 = arith.muli %arg0, %c1_i32 : i32
    %1 = arith.addi %0, %arg2 : i32
    %c0_i32 = arith.constant 0 : i32
    %2 = arith.minsi %1, %c0_i32 : i32
    %c0_i32_0 = arith.constant 0 : i32
    %c0_i32_1 = arith.constant 0 : i32
    return %arg1, %c0_i32_0, %2 : i32, i32, i32
  }
  func.func @transform_2(%arg0: i32, %arg1: i32, %arg2: i32) -> (i32, i32, i32, i32) {
    %c0_i32 = arith.constant 0 : i32
    %c0_i32_0 = arith.constant 0 : i32
    %c0_i32_1 = arith.constant 0 : i32
    return %arg0, %arg1, %c0_i32, %c0_i32_0 : i32, i32, i32, i32
  }
}

</mosaic_0001>

<bundles_post_ra>
// kernel: tpu_custom_call.1
= control target key start
LH: loop header
LB: loop body
LE: loop exit
PB: predicated region body
PF: predicated region fallthrough
CT: control target
= control target key end

     0   :  { %7 = vsyncpa [#allocation6], 0  ;;  %s1161_s0 = inlined_call_operand.hbm [shape: f32[2,4,256], index: 0, kind: input, shape index: {}]   ;;  %s1162_s1 = inlined_call_operand.hbm [shape: s32[2,1,256], index: 1, kind: input, shape index: {}]   ;;  %s1163_s2 = inlined_call_operand.vmem [shape: f32[1,2,4,3], index: 2, kind: output, shape index: {}]  }
   0x1   :  { %9 = vsyncpa [#allocation6 + $0x1], 0 }
   0x2   :  { %10 = vsyncpa [#allocation8], 0 }
   0x3   :  { %12 = vsyncpa [#allocation8 + $0x1], 0  ;;  %s932_s9 = smov 0   ;;  %s934_s10 = smov 0  }
   0x4   :  { %s936_s11 = smov 0   ;;  %s938_s12 = smov 0  }
   0x5   :  { %s940_s13 = smov 0   ;;  %s942_s14 = smov 0  }
   0x6 LB: > { %s706_s15 = sadd.s32 4294967295, %s910_s14   ;;  %s33_s16 = sadd.s32 1, %s906_s13  ;;  %s910_s14 = sphi %s942_s14, %s18_s14   ;;  %s906_s13 = sphi %s940_s13, %s1177_s13   ;;  %s902_s12 = sphi %s938_s12, %s1176_s12   ;;  %s898_s11 = sphi %s936_s11, %s1175_s11   ;;  %s894_s10 = sphi %s934_s10, %s1174_s10   ;;  %s890_s9 = sphi %s932_s9, %s1173_s9  }
   0x7   : > { %p35_p0 = scmp.ge.s32.totalorder %s33_s16, 2  ;;  %s52_s17 = sadd.s32 1, %s898_s11 }
   0x8   : > { %p59_p1 = scmp.ne.s32.totalorder %s898_s11, %s894_s10  ;;  %p60_p2 = scmp.eq.s32.totalorder %s910_s14, 0 }
   0x9   : > { %s1179_s16 = smov (%p35_p0, %s33_s16), 0  ;;  %p65_p4 = scmp.ne.s32.totalorder %s894_s10, %s890_s9 }
   0xa   : > { %p968_p3 = por %p60_p2, %p59_p1  ;;  %s47_s19 = ssub.s32 %s906_s13, %s1179_s16 }
   0xb   : > { %p66_p5 = scmp.eq.s32.totalorder %s706_s15, 0  ;;  %p50_p6 = scmp.eq.s32.totalorder %s47_s19, 0 }
   0xc   : > { %p737_p8 = scmp.lt.s32.totalorder %s910_s14, 2  ;;  %s984_s22 = sand.u32 1, %s898_s11  }
   0xd   : > { %p975_p7 = por %p66_p5, %p65_p4  ;;  %s724_s23 = sshll.u32 %s906_s13, 7 }
   0xe   : > { %s981_s21 = scalar_select %p50_p6, %s898_s11, %s52_s17  }
   0xf   : > { %s1166_s20 = scalar_select %p975_p7, 1, 0 }
  0x10   : > { %s710_s24 = sshll.u32 %s984_s22, 3  ;;  %s991_s27 = scalar_lea.hbm %s1161_s0, %s724_s23 }
  0x11   : > { %s155_s28 = scalar_lea.vmem [#allocation5], %s710_s24  ;;  %p995_p9 = pnand %p737_p8, %p968_p3 }
  0x12   : > { %s168_s29 = sshll.u32 %s155_s28, 4  ;;  %s152_s3 = scalar_lea.sflag [#allocation6], %s984_s22  ;;  %s999_s29 = int_to_ptr.vmem [resolvable:$true] %s168_s29 }
  0x13   : > { %s796_s4 = scalar_lea.hbm %s991_s27, 128  ;;  %p798_p13 = pneg %p995_p9 }
  0x14   : > { %p797_p12 = scmp.ne.s32.totalorder %s991_s27, %s796_s4  ;;  %s801_s7 = scalar_lea.hbm %s1161_s0, 256 }
  0x15   : > { %p802_p2 = scmp.lt.u32.totalorder %s991_s27, %s1161_s0  ;;  %p803_p3 = scmp.lt.u32.totalorder %s801_s7, %s796_s4 }
  0x16   : > { %p799_p0 = pnand %p798_p13, %p797_p12  ;;  %p805_p5 = scmp.lt.u32.totalorder %s796_s4, %s991_s27 }
  0x17   : > { %p804_p4 = por %p803_p3, %p802_p2 }
  0x18   : > { %p800_p1 = pneg %p799_p0 }
  0x19   : > { %p806_p6 = por %p805_p5, %p804_p4 }
  0x1b   : > { %p807_p8 = pnand %p806_p6, %p800_p1 }
  0x1d   : > { %810 = shalt.err (!%p807_p8)
}
  0x1e   : > { %s811_s15 = scalar_lea.vmem %s999_s29, 128  ;;  %s912_s17 = smov [#allocation5]  }
  0x1f   : > { %p812_p12 = scmp.ne.s32.totalorder %s999_s29, %s811_s15  ;;  %s816_s18 = sshll.u32 %s912_s17, 4  ;;  %s817_s18 = int_to_ptr.vmem [resolvable:$false] %s816_s18 }
  0x20   : > { %s818_s19 = scalar_lea.vmem %s817_s18, 256  ;;  %p819_p11 = scmp.lt.s32.totalorder %s999_s29, %s817_s18 }
  0x21   : > { %p814_p0 = pnand %p812_p12, %p798_p13  ;;  %p820_p2 = scmp.lt.s32.totalorder %s818_s19, %s811_s15 }
  0x23   : > { %p815_p10 = pneg %p814_p0  ;;  %p821_p3 = por %p820_p2, %p819_p11 }
  0x25   : > { %p822_p4 = pnand %p821_p3, %p815_p10 }
  0x27   : > { %825 = shalt.err (!%p822_p4)
}
  0x28   : > { %733 = dma.hbm_to_vmem [thread:$0]  (!%p995_p9), %s991_s27, 128, %s999_s29, %s152_s3  }
  0x29   : > { %p1168_p1 = scmp.lt.s32.totalorder %s910_s14, 3  ;;  %p1169_p5 = scmp.ge.s32.totalorder %s910_s14, 1 }
  0x2a   : > { %s713_s24 = sshll.u32 %s984_s22, 1  ;;  %s725_s25 = sshll.u32 %s906_s13, 5 }
  0x2b   : > { %p1033_p6 = pnand %p1169_p5, %p1168_p1  ;;  %s1042_s4 = scalar_lea.hbm %s1162_s1, %s725_s25 }
  0x2c   : > { %s179_s5 = scalar_lea.vmem [#allocation7], %s713_s24  ;;  %s176_s27 = scalar_lea.sflag [#allocation8], %s984_s22 }
  0x2d   : > { %s1170_s23 = scalar_select %p1033_p6, 1, 0 }
  0x2e   : > { %s192_s6 = sshll.u32 %s179_s5, 4  ;;  %s826_s29 = scalar_lea.hbm %s1042_s4, 32  ;;  %s193_s6 = int_to_ptr.vmem [resolvable:$true] %s192_s6 }
  0x2f   : > { %p827_p10 = scmp.ne.s32.totalorder %s1042_s4, %s826_s29  ;;  %s831_s8 = scalar_lea.hbm %s1162_s1, 64 }
  0x30   : > { %p832_p12 = scmp.lt.u32.totalorder %s1042_s4, %s1162_s1  ;;  %p833_p0 = scmp.lt.u32.totalorder %s831_s8, %s826_s29 }
  0x31   : > { %p829_p11 = pnand %p827_p10, %p798_p13  ;;  %p835_p3 = scmp.lt.u32.totalorder %s826_s29, %s1042_s4 }
  0x32   : > { %p834_p2 = por %p833_p0, %p832_p12 }
  0x33   : > { %p830_p8 = pneg %p829_p11 }
  0x34   : > { %p836_p4 = por %p835_p3, %p834_p2 }
  0x36   : > { %p837_p1 = pnand %p836_p4, %p830_p8 }
  0x38   : > { %840 = shalt.err (!%p837_p1)
}
  0x39   : > { %s841_s22 = scalar_lea.vmem %s193_s6, 32  ;;  %s913_s17 = smov [#allocation7]  }
  0x3a   : > { %p842_p5 = scmp.ne.s32.totalorder %s193_s6, %s841_s22  ;;  %s846_s18 = sshll.u32 %s913_s17, 4  ;;  %s847_s18 = int_to_ptr.vmem [resolvable:$false] %s846_s18 }
  0x3b   : > { %s848_s19 = scalar_lea.vmem %s847_s18, 64  ;;  %p849_p7 = scmp.lt.s32.totalorder %s193_s6, %s847_s18 }
  0x3c   : > { %p844_p10 = pnand %p842_p5, %p798_p13  ;;  %p850_p6 = scmp.lt.s32.totalorder %s848_s19, %s841_s22 }
  0x3e   : > { %p845_p11 = pneg %p844_p10  ;;  %p851_p0 = por %p850_p6, %p849_p7 }
  0x40   : > { %p852_p12 = pnand %p851_p0, %p845_p11 }
  0x42   : > { %855 = shalt.err (!%p852_p12)
}
  0x43   : > { %736 = dma.hbm_to_vmem [thread:$0]  (!%p995_p9), %s1042_s4, 32, %s193_s6, %s176_s27  }
  0x44   : > { %p1171_p8 = scmp.ne.s32.totalorder %s1170_s23, 0 }
  0x45   : > { %s203_s24 = sand.u32 (!%p1171_p8), 1, %s894_s10   ;;  %p1172_p13 = scmp.ne.s32.totalorder (!%p1171_p8), %s1166_s20, 0 }
  0x46   : > { %201 = sbr.rel (%p1171_p8) target bundleno = 333 (0x14d), region = 28  ;;  %s717_s25 = sshll.u32 (!%p1171_p8), %s203_s24, 3 }
  0x47   : > { %s204_s26 = scalar_lea.sflag (!%p1171_p8), [#allocation6], %s203_s24  ;;  %s207_s28 = scalar_lea.vmem (!%p1171_p8), [#allocation5], %s717_s25 }
  0x4d   : > { %881 = dma.done.wait (%p1172_p13), %s204_s26, 128  }
  0x4e   : > { %883 = vsyncadd (%p1172_p13), %s204_s26, 4294967168  ;;  %s718_s5 = sshll.u32 %s203_s24, 1  ;;  %s213_s29 = scalar_lea.sflag [#allocation8], %s203_s24 }
  0x4f   : > { %s216_s30 = scalar_lea.vmem [#allocation7], %s718_s5 }
  0x50   : > { %885 = dma.done.wait (%p1172_p13), %s213_s29, 32  }
  0x51   : > { %887 = vsyncadd (%p1172_p13), %s213_s29, 4294967264  ;;  %v319_v0 = vlaneseq  ;;  %v914_v1 = vmov 0.0   ;;  %v915_v3 = vmov 1983009808   ;;  %vm273_vm0 = vcmask 1043456   ;;  %v268_v10 = vld [vmem:[%s207_s28] sm:$0xff] }
  0x52   : > { %265 = vst [vmem:[#allocation2] sm:$0xf] %v914_v1  ;;  %266 = vst [vmem:[#allocation3] sm:$0xf] %v914_v1  ;;  %v344_v4 = vunpack.c.l.s4 %v915_v3  ;;  %v916_v7 = vmov 1934713408   ;;  %v271_v12 = vcombine.high %v268_v10, %v268_v10 }
  0x53   : > { %267 = vst [vmem:[#allocation4] sm:$0xf] %v914_v1  ;;  %v320_v2 = vshrl.u32 %v319_v0, 7  ;;  %v361_v8 = vunpack.c.l.s4 %v916_v7  ;;  %v269_v11 = vld [vmem:[%s216_s30] sm:$0x3]  ;;  %v274_v13 = vsel %vm273_vm0, %v268_v10, -inf }
  0x54   : > { %v345_v9 = vunpack.c.0.s8 %v344_v4  ;;  %v275_v16 = vrot.slane %v274_v13, 4  ;;  %v281_v18 = vsel %vm273_vm0, %v271_v12, -inf  ;;  %vm376_vm3 = vcmask 1041408   ;;  %p255_p7 = scmp.lt.s32.totalorder %s902_s12, 1 }
  0x55   : > { %v323_v5 = vsub.s32 0, %v320_v2  ;;  %v327_v6 = vsub.s32 1, %v320_v2  ;;  %v362_v17 = vunpack.c.0.s8 %v361_v8  ;;  %v282_v21 = vrot.slane %v281_v18, 4 }
  0x56   : > { %v1080_v19 = vsub.s32 %v345_v9, %v320_v2  ;;  %v276_v20 = vmax.f32 %v274_v13, %v275_v16  ;;  %vm409_vm4 = vcmask 1041409   ;;  %vm411_vm5 = vcmask 1042434   ;;  %s1181_s12 = smov (!%p255_p7, %s902_s12), 1 }
  0x57   : > { %v324_v14 = vrot.slane %v269_v11, %v323_v5  ;;  %v328_v15 = vrot.slane %v269_v11, %v327_v6  ;;  %v283_v27 = vmax.f32 %v281_v18, %v282_v21  ;;  %v1092_v28 = vsub.s32 %v362_v17, %v320_v2  ;;  %s719_s20 = sshll.u32 %s1181_s12, 2 }
  0x58   : > { %v277_v26 = vrot.slane %v276_v20, 2  ;;  %vm413_vm6 = vcmask 1043459   ;;  %s260_s6 = scalar_lea.vmem %s1163_s2, %s719_s20  ;;  %vm571_vm7 = vcmask 3072   ;;  %vm577_vm8 = vcmask 11272  }
  0x59   : > { %vm329_vm1 = vcmp.eq.s32.totalorder %v324_v14, %v320_v2  ;;  %vm330_vm2 = vcmp.eq.s32.totalorder %v328_v15, %v320_v2  ;;  %v284_v32 = vrot.slane %v283_v27, 2  ;;  %vm583_vm9 = vcmask 19472  }
  0x5a   : > { %v1083_v22 = vsel %vm329_vm1, 1.0, %v914_v1  ;;  %v1086_v23 = vsel %vm330_vm2, 1.0, %v914_v1  ;;  %v278_v31 = vmax.f32 %v276_v20, %v277_v26  ;;  %v493_v11 = vld [vmem:[#allocation4] sm:$0xf] }
  0x5b   : > { %v500_v24 = vrot.slane %v1083_v22, %v1080_v19  ;;  %v507_v25 = vrot.slane %v1086_v23, %v1080_v19  ;;  %v285_v36 = vmax.f32 %v283_v27, %v284_v32 }
  0x5c   : > { %v279_v35 = vrot.slane %v278_v31, 1 }
  0x5d   : > { %v508_v29 = vcombine.low %v500_v24, %v507_v25  ;;  %v509_v30 = vcombine.high %v500_v24, %v507_v25  ;;  %v286_v42 = vrot.slane %v285_v36, 1 }
  0x5e   : > { %v280_v41 = vmax.f32 %v278_v31, %v279_v35 }
  0x5f   : > { %v516_v33 = vrot.slane %v508_v29, %v1092_v28  ;;  %v523_v34 = vrot.slane %v509_v30, %v1092_v28  ;;  %v287_v47 = vmax.f32 %v285_v36, %v286_v42 }
  0x61   : > { %v524_v37 = vcombine.high %v516_v33, %v914_v1  ;;  %v525_v38 = vcombine.high %v523_v34, %v914_v1  ;;  %v526_v39 = vsel %vm376_vm3, %v516_v33, 0.0  ;;  %v540_v40 = vsel %vm376_vm3, %v523_v34, 0.0 }
  0x62   : > { %v527_v43 = vrot.slane %v526_v39, 4  ;;  %v541_v44 = vrot.slane %v540_v40, 4  ;;  %v290_v52 = vcombine.low %v280_v41, %v287_v47 }
  0x63   : > { %v533_v45 = vsel %vm376_vm3, %v524_v37, 0.0  ;;  %v547_v46 = vsel %vm376_vm3, %v525_v38, 0.0 }
  0x64   : > { %v528_v48 = vadd.f32 %v527_v43, %v526_v39  ;;  %v534_v49 = vrot.slane %v533_v45, 4  ;;  %v542_v50 = vadd.f32 %v541_v44, %v540_v40  ;;  %v548_v51 = vrot.slane %v547_v46, 4 }
  0x65   : > { %v292_v57 = vsub.f32 %v268_v10, %v290_v52  ;;  %v338_v40 = vcombine.low %v1083_v22, %v1086_v23 }
  0x66   : > { %v529_v53 = vrot.slane %v528_v48, 2  ;;  %v535_v54 = vadd.f32 %v534_v49, %v533_v45  ;;  %v543_v55 = vrot.slane %v542_v50, 2  ;;  %v549_v56 = vadd.f32 %v548_v51, %v547_v46 }
  0x67   : > { %v293_v62 = vmul.f32 1.442695, %v292_v57 }
  0x68   : > { %v530_v58 = vadd.f32 %v529_v53, %v528_v48  ;;  %v536_v59 = vrot.slane %v535_v54, 2  ;;  %v544_v60 = vadd.f32 %v543_v55, %v542_v50  ;;  %v550_v61 = vrot.slane %v549_v56, 2 }
  0x69   : > { %790 = vpow2.f32 %v293_v62 }
  0x6a   : > { %v531_v63 = vrot.slane %v530_v58, 1  ;;  %v537_v0 = vadd.f32 %v536_v59, %v535_v54  ;;  %v545_v2 = vrot.slane %v544_v60, 1  ;;  %v551_v3 = vadd.f32 %v550_v61, %v549_v56 }
  0x6c   : > { %v532_v4 = vadd.f32 %v531_v63, %v530_v58  ;;  %v538_v5 = vrot.slane %v537_v0, 1  ;;  %v546_v6 = vadd.f32 %v545_v2, %v544_v60  ;;  %v552_v7 = vrot.slane %v551_v3, 1 }
  0x6e   : > { %v539_v8 = vadd.f32 %v538_v5, %v537_v0  ;;  %v553_v9 = vadd.f32 %v552_v7, %v551_v3 }
  0x70   : > { %v558_v10 = vsel %vm409_vm4, %v539_v8, %v532_v4 }
  0x71   : > { %v559_v12 = vsel %vm411_vm5, %v546_v6, %v558_v10 }
  0x72   : > { %v560_v13 = vsel %vm413_vm6, %v553_v9, %v559_v12 }
  0x73   : > { %v562_v14 = vadd.f32 %v560_v13, %v493_v11  ;;  %v791_v15 = vpop.eup %790 }
  0x74   : > { %v296_v16 = vcombine.high %v791_v15, %v791_v15  ;;  %v298_v17 = vsel %vm273_vm0, %v791_v15, 0.0 }
  0x75   : > { %563 = vst [vmem:[#allocation4] sm:$0xf] %v562_v14  ;;  %v299_v18 = vrot.slane %v298_v17, 4 }
  0x76   : > { %v305_v20 = vsel %vm273_vm0, %v296_v16, 0.0 }
  0x77   : > { %v300_v21 = vadd.f32 %v299_v18, %v298_v17  ;;  %v306_v24 = vrot.slane %v305_v20, 4 }
  0x79   : > { %v301_v25 = vrot.slane %v300_v21, 2  ;;  %v307_v26 = vadd.f32 %v306_v24, %v305_v20 }
  0x7b   : > { %v302_v30 = vadd.f32 %v301_v25, %v300_v21  ;;  %v308_v31 = vrot.slane %v307_v26, 2 }
  0x7c   : > { %v579_v27 = vld [vmem:[#allocation4] sm:$0xf] }
  0x7d   : > { %v580_v29 = vsel %vm273_vm0, %v579_v27, 0.0  ;;  %v303_v32 = vrot.slane %v302_v30, 1  ;;  %v309_v33 = vadd.f32 %v308_v31, %v307_v26 }
  0x7e   : > { %581 = vadd.xlane.f32.xlu1 %v580_v29 }
  0x7f   : > { %v304_v34 = vadd.f32 %v303_v32, %v302_v30  ;;  %v310_v35 = vrot.slane %v309_v33, 1 }
  0x81   : > { %v311_v36 = vadd.f32 %v310_v35, %v309_v33  ;;  %792 = vrcp.f32 %v304_v34 }
  0x83   : > { %794 = vrcp.f32 %v311_v36 }
  0x8b   : > { %v793_v37 = vpop.eup %792 }
  0x8d   : > { %v795_v38 = vpop.eup %794 }
  0x8e   : > { %v316_v39 = vcombine.low %v793_v37, %v795_v38 }
  0x90   : > { %v318_v41 = vmul.f32 %v791_v15, %v316_v39 }
  0x92   : > { %v340_v42 = vmul.f32 %v338_v40, %v318_v41  ;;  %v419_v43 = vmul.f32 %v318_v41, %v318_v41 }
  0x94   : > { %v342_v44 = vrot.slane %v340_v42, 4  ;;  %v349_v45 = vrot.slane %v340_v42, %v1080_v19  ;;  %v421_v46 = vrot.slane %v419_v43, 4  ;;  %v428_v47 = vrot.slane %v419_v43, %v1080_v19 }
  0x96   : > { %v357_v48 = vrot.slane %v342_v44, %v1080_v19  ;;  %v436_v49 = vrot.slane %v421_v46, %v1080_v19 }
  0x98   : > { %v358_v50 = vcombine.low %v349_v45, %v357_v48  ;;  %v359_v51 = vcombine.high %v349_v45, %v357_v48  ;;  %v437_v52 = vcombine.low %v428_v47, %v436_v49  ;;  %v438_v53 = vcombine.high %v428_v47, %v436_v49 }
  0x9a   : > { %v366_v54 = vrot.slane %v358_v50, %v1092_v28  ;;  %v373_v22 = vrot.slane %v359_v51, %v1092_v28  ;;  %v445_v23 = vrot.slane %v437_v52, %v1092_v28  ;;  %v452_v55 = vrot.slane %v438_v53, %v1092_v28  ;;  %v335_v51 = vld [vmem:[#allocation2] sm:$0xf] }
  0x9c   : > { %v374_v56 = vcombine.high %v366_v54, %v914_v1  ;;  %v375_v57 = vcombine.high %v373_v22, %v914_v1  ;;  %v377_v58 = vsel %vm376_vm3, %v366_v54, 0.0  ;;  %v391_v19 = vsel %vm376_vm3, %v373_v22, 0.0 }
  0x9d   : > { %v378_v59 = vrot.slane %v377_v58, 4  ;;  %v392_v60 = vrot.slane %v391_v19, 4  ;;  %v453_v61 = vcombine.high %v445_v23, %v914_v1  ;;  %v455_v62 = vsel %vm376_vm3, %v445_v23, 0.0 }
  0x9e   : > { %v384_v63 = vsel %vm376_vm3, %v374_v56, 0.0  ;;  %v398_v0 = vsel %vm376_vm3, %v375_v57, 0.0  ;;  %v456_v2 = vrot.slane %v455_v62, 4  ;;  %v454_v28 = vcombine.high %v452_v55, %v914_v1  ;;  %v418_v57 = vld [vmem:[#allocation3] sm:$0xf] }
  0x9f   : > { %v379_v3 = vadd.f32 %v378_v59, %v377_v58  ;;  %v385_v4 = vrot.slane %v384_v63, 4  ;;  %v393_v5 = vadd.f32 %v392_v60, %v391_v19  ;;  %v399_v6 = vrot.slane %v398_v0, 4 }
  0xa0   : > { %v457_v7 = vadd.f32 %v456_v2, %v455_v62  ;;  %v462_v8 = vsel %vm376_vm3, %v453_v61, 0.0  ;;  %v469_v9 = vsel %vm376_vm3, %v452_v55, 0.0  ;;  %v476_v11 = vsel %vm376_vm3, %v454_v28, 0.0 }
  0xa1   : > { %v380_v10 = vrot.slane %v379_v3, 2  ;;  %v386_v12 = vadd.f32 %v385_v4, %v384_v63  ;;  %v394_v13 = vrot.slane %v393_v5, 2  ;;  %v400_v14 = vadd.f32 %v399_v6, %v398_v0 }
  0xa2   : > { %v458_v15 = vrot.slane %v457_v7, 2  ;;  %v463_v16 = vrot.slane %v462_v8, 4  ;;  %v470_v17 = vrot.slane %v469_v9, 4  ;;  %v477_v18 = vrot.slane %v476_v11, 4 }
  0xa3   : > { %v381_v1 = vadd.f32 %v380_v10, %v379_v3  ;;  %v387_v20 = vrot.slane %v386_v12, 2  ;;  %v395_v21 = vadd.f32 %v394_v13, %v393_v5  ;;  %v401_v24 = vrot.slane %v400_v14, 2 }
  0xa4   : > { %v459_v25 = vadd.f32 %v458_v15, %v457_v7  ;;  %v464_v26 = vadd.f32 %v463_v16, %v462_v8  ;;  %v471_v27 = vadd.f32 %v470_v17, %v469_v9  ;;  %v478_v29 = vadd.f32 %v477_v18, %v476_v11 }
  0xa5   : > { %v382_v30 = vrot.slane %v381_v1, 1  ;;  %v388_v31 = vadd.f32 %v387_v20, %v386_v12  ;;  %v396_v32 = vrot.slane %v395_v21, 1  ;;  %v402_v33 = vadd.f32 %v401_v24, %v400_v14 }
  0xa6   : > { %v460_v34 = vrot.slane %v459_v25, 1  ;;  %v465_v35 = vrot.slane %v464_v26, 2  ;;  %v472_v36 = vrot.slane %v471_v27, 2  ;;  %v479_v37 = vrot.slane %v478_v29, 2 }
  0xa7   : > { %v383_v38 = vadd.f32 %v382_v30, %v381_v1  ;;  %v389_v39 = vrot.slane %v388_v31, 1  ;;  %v403_v40 = vrot.slane %v402_v33, 1  ;;  %v397_v41 = vadd.f32 %v396_v32, %v395_v21 }
  0xa8   : > { %v466_v42 = vadd.f32 %v465_v35, %v464_v26  ;;  %v473_v43 = vadd.f32 %v472_v36, %v471_v27  ;;  %v480_v44 = vadd.f32 %v479_v37, %v478_v29  ;;  %v461_v47 = vadd.f32 %v460_v34, %v459_v25 }
  0xa9   : > { %v390_v45 = vadd.f32 %v389_v39, %v388_v31  ;;  %v404_v46 = vadd.f32 %v403_v40, %v402_v33 }
  0xaa   : > { %v467_v48 = vrot.slane %v466_v42, 1  ;;  %v474_v49 = vrot.slane %v473_v43, 1  ;;  %v481_v50 = vrot.slane %v480_v44, 1 }
  0xab   : > { %v410_v52 = vsel %vm409_vm4, %v390_v45, %v383_v38 }
  0xac   : > { %v412_v53 = vsel %vm411_vm5, %v397_v41, %v410_v52  ;;  %v468_v54 = vadd.f32 %v467_v48, %v466_v42  ;;  %v475_v22 = vadd.f32 %v474_v49, %v473_v43  ;;  %v482_v23 = vadd.f32 %v481_v50, %v480_v44 }
  0xad   : > { %v414_v55 = vsel %vm413_vm6, %v404_v46, %v412_v53 }
  0xae   : > { %v416_v56 = vadd.f32 %v414_v55, %v335_v51  ;;  %v487_v58 = vsel %vm409_vm4, %v468_v54, %v461_v47 }
  0xaf   : > { %v488_v19 = vsel %vm411_vm5, %v475_v22, %v487_v58 }
  0xb0   : > { %417 = vst [vmem:[#allocation2] sm:$0xf] %v416_v56  ;;  %v489_v59 = vsel %vm413_vm6, %v482_v23, %v488_v19 }
  0xb1   : > { %v491_v60 = vadd.f32 %v489_v59, %v418_v57 }
  0xb3   : > { %492 = vst [vmem:[#allocation3] sm:$0xf] %v491_v60 }
  0xb7   : > { %v567_v61 = vld [vmem:[#allocation2] sm:$0xf] }
  0xb8   : > { %v568_v62 = vsel %vm273_vm0, %v567_v61, 0.0 }
  0xb9   : > { %569 = vadd.xlane.f32.xlu0 %v568_v62 }
  0xba   : > { %v573_v63 = vld [vmem:[#allocation3] sm:$0xf] }
  0xbb   : > { %v574_v0 = vsel %vm273_vm0, %v573_v63, 0.0 }
  0xbd   : > { %575 = vadd.xlane.f32.xlu0 %v574_v0 }
 0x10b   : > { %v582_v28 = vpop.xlane.xlu1 %581 }
 0x146   : > { %v570_v2 = vpop.xlane.xlu0 %569 }
 0x147   : > { %572 = vst.msk [vmem:[%s260_s6] sm:$0xf] %vm571_vm7, %v570_v2 }
 0x14a   : > { %v576_v3 = vpop.xlane.xlu0 %575 }
 0x14b   : > { %578 = vst.msk [vmem:[%s260_s6] sm:$0xf] %vm577_vm8, %v576_v3 }
 0x14c   : > { %584 = vst.msk [vmem:[%s260_s6] sm:$0xf] %vm583_vm9, %v582_v28 }
 0x14d PF: > { %s18_s14 = sadd.s32 1, %s910_s14   ;;  %s1173_s9 = smov %s894_s10 }
 0x14e   : > { %p15_p9 = scmp.ge.s32.totalorder %s18_s14, 4   ;;  %s1174_s10 = smov %s898_s11 }
 0x14f   : > { %s1175_s11 = smov %s981_s21  ;;  %s1176_s12 = smov %s906_s13 }
 0x150   : > { %s1177_s13 = smov %s1179_s16  ;;  %17 = sbr.rel (!%p15_p9) target bundleno = 6 (0x6), region = 89 }
 0x157   :  { %612 = vsyncpa [#allocation6], 1 }
 0x158   :  { %614 = vsyncpa [#allocation6 + $0x1], 1 }
 0x159   :  { %615 = vsyncpa [#allocation8], 1 }
 0x15a   :  { %617 = vsyncpa [#allocation8 + $0x1], 1 }

</bundles_post_ra>
